<compile_context>
chip_gen: v7x
topology: tpu7x:2x2x1
jax: 0.10.0
libtpu: 0.0.40
codegen_flags: <defaults>
</compile_context>

<pallas_src>
import functools

import jax
import jax.numpy as jnp
import numpy as np
from jax import lax
from jax.experimental import pallas as pl
from jax.experimental.pallas import tpu as pltpu


# --------------------------------------------------------------------------- kernel
def _fused_graph_kernel(nodes_ref, a_ref, dinv_ref,
                        wp_ref, bp_ref,
                        w1_ref, b1_ref,
                        w2_ref, b2_ref,
                        wt_ref, bt_ref,
                        out_ref,
                        proj_s, xw1_s, xw2_s,
                        *, mx_dtype):
    phase = pl.program_id(0)          # 0: prep, 1: conv1+relu, 2: conv2+transfer
    row = pl.program_id(1)            # node row-tile index
    tm = out_ref.shape[0]
    r0 = pl.multiple_of(row * tm, tm)
    rows = pl.ds(r0, tm)
    dinv = dinv_ref[...]              # (tm, 1) f32 — needed by every phase

    @pl.when(phase == 0)
    def _prep():
        # feature_proj: 1x1 conv == per-node matmul; cache residual source and
        # the dinv-scaled X@W1 (column side of the folded GCN normalization).
        x = nodes_ref[...]
        proj = jnp.dot(x.astype(mx_dtype), wp_ref[...],
                       preferred_element_type=jnp.float32) + bp_ref[...]
        xw1 = jnp.dot(proj.astype(mx_dtype), w1_ref[...],
                      preferred_element_type=jnp.float32)
        proj_s[rows, :] = proj                               # residual source (f32)
        xw1_s[rows, :] = (dinv * xw1).astype(xw1_s.dtype)    # dinv * (X @ W1)

    @pl.when(phase == 1)
    def _conv1():
        # GCNConv1 + ReLU:  h = relu(dinv_i*(A @ Ys + Ys_i) + b1),  Ys = dinv*X@W1
        a = a_ref[...]                                       # (tm, N) bf16 0/1
        agg = jnp.dot(a, xw1_s[...], preferred_element_type=jnp.float32)
        agg = agg + xw1_s[rows, :].astype(jnp.float32)       # self-loop (+I) term
        h = jnp.maximum(dinv * agg + b1_ref[...], 0.0)
        # TODO(synk): F.dropout between the convs is eval-mode identity here.
        xw2 = jnp.dot(h.astype(mx_dtype), w2_ref[...],
                      preferred_element_type=jnp.float32)
        xw2_s[rows, :] = (dinv * xw2).astype(xw2_s.dtype)    # dinv * (H @ W2)

    @pl.when(phase == 2)
    def _conv2_residual_transfer():
        # GCNConv2, residual add with `projected`, then transfer (1x1 conv).
        a = a_ref[...]
        agg = jnp.dot(a, xw2_s[...], preferred_element_type=jnp.float32)
        agg = agg + xw2_s[rows, :].astype(jnp.float32)
        gcn2 = dinv * agg + b2_ref[...]
        e3gcn = gcn2 + proj_s[rows, :]
        out = jnp.dot(e3gcn.astype(mx_dtype), wt_ref[...],
                      preferred_element_type=jnp.float32) + bt_ref[...]
        out_ref[...] = out.astype(out_ref.dtype)


# --------------------------------------------------------------------------- wrapper
_VMEM_BUDGET_BYTES = 40 * 2**20   # conservative: fits v7x's 64 MiB physical VMEM
_VMEM_LIMIT_BYTES = 48 * 2**20


def _round_up(x, m):
    return (x + m - 1) // m * m


def _pick_row_tile(n_pad, per_row_stream_bytes, fixed_bytes, budget_bytes,
                   granule=16, cap=1024):
    """Largest tm (multiple of granule, divides n_pad, <= cap) fitting the budget."""
    best = granule
    t = granule
    while t <= min(n_pad, cap):
        if (n_pad % t == 0
                and fixed_bytes + 2 * t * per_row_stream_bytes <= budget_bytes):
            best = t
        t += granule
    return best


def fused_graph_core(nodes, adj_mx, dinv, params_mx, *, tm, matmul_dtype,
                     vmem_limit_bytes):
    """Fused feature_proj -> GCN(2 layers) -> residual -> transfer on (N, C) nodes."""
    n, bc = nodes.shape
    assert adj_mx.shape == (n, n) and dinv.shape == (n, 1) and n % tm == 0
    hid = params_mx["w_proj"].shape[1]
    hidden = params_mx["w_g1"].shape[1]
    out_c = params_mx["w_t"].shape[1]
    nt = n // tm

    def full(shape):
        return pl.BlockSpec(shape, lambda p, i: (0, 0))      # resident weights/biases

    # Phase-aware streaming: the O(N^2) adjacency only advances in phases 1/2,
    # nodes only in phase 0, and the output block only advances in phase 2 so
    # phases 0/1 never write an output slab back to HBM.
    nodes_spec = pl.BlockSpec((tm, bc), lambda p, i: (jnp.where(p == 0, i, 0), 0))
    a_spec = pl.BlockSpec((tm, n), lambda p, i: (jnp.where(p == 0, 0, i), 0))
    dinv_spec = pl.BlockSpec((tm, 1), lambda p, i: (i, 0))
    out_spec = pl.BlockSpec((tm, out_c), lambda p, i: (jnp.where(p == 2, i, 0), 0))

    kernel = functools.partial(_fused_graph_kernel, mx_dtype=matmul_dtype)

    return pl.pallas_call(
        kernel,
        grid=(3, nt),                                         # (phase, row_tile)
        in_specs=[
            nodes_spec,                                       # nodes (N, bc)
            a_spec,                                           # adjacency row tile (tm, N) bf16
            dinv_spec,                                        # D^-1/2 (N, 1) f32
            full((bc, hid)), full((1, hid)),                  # feature_proj W, b
            full((hid, hidden)), full((1, hidden)),           # GCNConv1 W, b
            full((hidden, hid)), full((1, hid)),              # GCNConv2 W, b
            full((hid, out_c)), full((1, out_c)),             # transfer W, b
        ],
        out_specs=out_spec,
        out_shape=jax.ShapeDtypeStruct((n, out_c), nodes.dtype),
        scratch_shapes=[
            pltpu.VMEM((n, hid), jnp.float32),                # projected (residual)
            pltpu.VMEM((n, hidden), matmul_dtype),            # dinv * (X @ W1)
            pltpu.VMEM((n, hid), matmul_dtype),               # dinv * (H @ W2)
        ],
        compiler_params=pltpu.CompilerParams(
            # Phases are sequentially dependent and scratch is shared across the
            # whole row sweep, so both axes must stay "arbitrary".
            dimension_semantics=("arbitrary", "arbitrary"),
            vmem_limit_bytes=vmem_limit_bytes),
    )(nodes, adj_mx, dinv,
      params_mx["w_proj"], params_mx["b_proj"],
      params_mx["w_g1"], params_mx["b_g1"],
      params_mx["w_g2"], params_mx["b_g2"],
      params_mx["w_t"], params_mx["b_t"])


# --------------------------------------------------------------------------- forward
def graph_net_forward(e3, adj, params, *, block_rows=None,
                      matmul_dtype=jnp.bfloat16):
    """graph_net GNN core.

    e3  : (B, bc, H, W) NCHW feature map (the `e3` tensor of the reference forward)
    adj : (N, N) dense 0/1 symmetric adjacency with zero diagonal, N = B*H*W
          (GCNConv adds the self loops / normalization itself).
    """
    # TODO(synk): base_net (`net`) encoder (conv_ini, rb1, down_conv1/2, mrb1/2),
    # the DAM modules, the base_net decoder (up_conv1/2, mrb3, rb2, conv_last)
    # and enhance_net_nopool are not defined in the reference source; the kernel
    # implements the GNN core from the e3 feature map to e3_transferred.
    B, C, H, W = e3.shape
    n = B * H * W
    nodes = jnp.transpose(e3, (0, 2, 3, 1)).reshape(n, C)                 # (N, bc)

    # GCN normalization: deg = rowsum(A) + 1 (self loop). Precomputed here as a
    # tiny (N,1) input so the kernel never spends an adjacency HBM pass on it.
    deg = jnp.sum(adj.astype(jnp.float32), axis=1, keepdims=True) + 1.0
    dinv = lax.rsqrt(deg)                                                 # (N, 1)

    # Pad node count to a multiple of 128: padded nodes have zero adjacency
    # rows/cols (deg 1), contribute nothing to real rows, and are sliced off.
    a_it = jnp.dtype(matmul_dtype).itemsize
    granule = 16 if a_it < 4 else 8
    n_pad = _round_up(n, 128)

    hid = params["w_proj"].shape[1]
    hidden = params["w_g1"].shape[1]
    out_c = params["w_t"].shape[1]
    fixed = n_pad * (hid * 4 + (hidden + hid) * a_it)                     # scratch
    fixed += (C * hid + hid * hidden + hidden * hid + hid * out_c) * a_it
    fixed += (2 * hid + hidden + out_c) * 4                               # biases
    per_row = n_pad * a_it + C * 4 + 128 * 4 + _round_up(out_c, 128) * 4  # dbl-buf streams
    if block_rows is None:
        tm = _pick_row_tile(n_pad, per_row, fixed, _VMEM_BUDGET_BYTES,
                            granule=granule)
    else:
        tm = block_rows
        assert n_pad % tm == 0 and tm % granule == 0

    pad = n_pad - n
    nodes_p = jnp.pad(nodes, ((0, pad), (0, 0)))
    adj_p = jnp.pad(adj.astype(jnp.float32), ((0, pad), (0, pad)))
    dinv_p = jnp.pad(dinv, ((0, pad), (0, 0)), constant_values=1.0)

    # bf16 adjacency (0/1 exactly representable) halves the dominant HBM stream;
    # weights are bf16 MXU operands anyway (biases stay f32 for VPU math).
    adj_mx = adj_p.astype(matmul_dtype)
    params_mx = dict(params)
    for k in ("w_proj", "w_g1", "w_g2", "w_t"):
        params_mx[k] = params[k].astype(matmul_dtype)

    out = fused_graph_core(nodes_p, adj_mx, dinv_p, params_mx, tm=tm,
                           matmul_dtype=matmul_dtype,
                           vmem_limit_bytes=_VMEM_LIMIT_BYTES)            # (n_pad, bc)
    out = out[:n]
    return jnp.transpose(out.reshape(B, H, W, out_c), (0, 3, 1, 2))


# --------------------------------------------------------------------------- reference
def _reference_forward(e3, adj, params):
    """Pure-JAX f32 reference of the same GNN core (dense GCN formulation)."""
    B, C, H, W = e3.shape
    x = jnp.transpose(e3, (0, 2, 3, 1)).reshape(-1, C)
    proj = x @ params["w_proj"] + params["b_proj"]
    n = adj.shape[0]
    a_hat = adj + jnp.eye(n, dtype=adj.dtype)
    dinv = 1.0 / jnp.sqrt(jnp.sum(a_hat, axis=1))
    a_norm = a_hat * dinv[:, None] * dinv[None, :]
    h = jnp.maximum(a_norm @ (proj @ params["w_g1"]) + params["b_g1"], 0.0)
    g2 = a_norm @ (h @ params["w_g2"]) + params["b_g2"]
    out = (g2 + proj) @ params["w_t"] + params["b_t"]
    return jnp.transpose(out.reshape(B, H, W, -1), (0, 3, 1, 2))


# --------------------------------------------------------------------------- main
if __name__ == "__main__":
    key = jax.random.PRNGKey(0)
    # small shapes consistent with the module (bc=16, hid_size=64, hidden_size=128)
    B, bc, H, W = 2, 16, 8, 8
    hid_size, hidden_size = 64, 128
    N = B * H * W  # 128 graph nodes

    keys = jax.random.split(key, 8)
    e3 = jax.random.normal(keys[0], (B, bc, H, W), jnp.float32)

    # symmetric 0/1 adjacency (undirected graph, no self loops; GCNConv adds them)
    a_rand = (jax.random.uniform(keys[1], (N, N)) > 0.7).astype(jnp.float32)
    adj = jnp.maximum(a_rand, a_rand.T) * (1.0 - jnp.eye(N, dtype=jnp.float32))

    def init_w(k, cin, cout):
        return jax.random.normal(k, (cin, cout), jnp.float32) / jnp.sqrt(float(cin))

    params = {
        # feature_proj: Conv2d(bc, hid_size, 1)
        "w_proj": init_w(keys[2], bc, hid_size),
        "b_proj": 0.01 * jax.random.normal(keys[6], (1, hid_size), jnp.float32),
        # GCNConv(hid_size, hidden_size) / GCNConv(hidden_size, hid_size)
        "w_g1": init_w(keys[3], hid_size, hidden_size),
        "b_g1": jnp.zeros((1, hidden_size), jnp.float32),
        "w_g2": init_w(keys[4], hidden_size, hid_size),
        "b_g2": jnp.zeros((1, hid_size), jnp.float32),
        # transfer: Conv2d(hid_size, bc, 1)
        "w_t": init_w(keys[5], hid_size, bc),
        "b_t": 0.01 * jax.random.normal(keys[7], (1, bc), jnp.float32),
    }

    # block_rows=64 exercises the multi-row-tile path (grid=(3, 2)).
    fwd = jax.jit(functools.partial(graph_net_forward, block_rows=64))
    out = fwd(e3, adj, params)
    jax.block_until_ready(out)

    assert out.shape == (B, bc, H, W) and out.dtype == jnp.float32
    ref = _reference_forward(e3, adj, params)
    np.testing.assert_allclose(np.asarray(out), np.asarray(ref),
                               rtol=5e-2, atol=5e-2)
    print("KERNEL_OK")
</pallas_src>

<mosaic_0001>
module attributes {stable_mosaic.version = 11 : i64} {
  func.func @_fused_graph_kernel(%arg0: i32, %arg1: i32, %arg2: memref<64x16xf32, #tpu.memory_space<vmem>>, %arg3: memref<64x128xbf16, #tpu.memory_space<vmem>>, %arg4: memref<64x1xf32, #tpu.memory_space<vmem>>, %arg5: memref<16x64xbf16, #tpu.memory_space<vmem>>, %arg6: memref<1x64xf32, #tpu.memory_space<vmem>>, %arg7: memref<64x128xbf16, #tpu.memory_space<vmem>>, %arg8: memref<1x128xf32, #tpu.memory_space<vmem>>, %arg9: memref<128x64xbf16, #tpu.memory_space<vmem>>, %arg10: memref<1x64xf32, #tpu.memory_space<vmem>>, %arg11: memref<64x16xbf16, #tpu.memory_space<vmem>>, %arg12: memref<1x16xf32, #tpu.memory_space<vmem>>, %arg13: memref<64x16xf32, #tpu.memory_space<vmem>>, %arg14: memref<128x64xf32, #tpu.memory_space<vmem>>, %arg15: memref<128x128xbf16, #tpu.memory_space<vmem>>, %arg16: memref<128x64xbf16, #tpu.memory_space<vmem>>) attributes {dimension_semantics = [#tpu.dimension_semantics<arbitrary>, #tpu.dimension_semantics<arbitrary>], iteration_bounds = array<i64: 3, 2>, scalar_prefetch = 0 : i64, scratch_operands = 3 : i64, tpu.core_type = #tpu.core_type<tc>, window_params = [{transform_indices = @transform_0, window_bounds = array<i64: 64, 16>}, {transform_indices = @transform_1, window_bounds = array<i64: 64, 128>}, {transform_indices = @transform_2, window_bounds = array<i64: 64, 1>}, {pipeline_mode = #tpu.pipeline_mode<synchronous>, transform_indices = @transform_3, window_bounds = array<i64: 16, 64>}, {pipeline_mode = #tpu.pipeline_mode<synchronous>, transform_indices = @transform_4, window_bounds = array<i64: 1, 64>}, {pipeline_mode = #tpu.pipeline_mode<synchronous>, transform_indices = @transform_5, window_bounds = array<i64: 64, 128>}, {pipeline_mode = #tpu.pipeline_mode<synchronous>, transform_indices = @transform_6, window_bounds = array<i64: 1, 128>}, {pipeline_mode = #tpu.pipeline_mode<synchronous>, transform_indices = @transform_7, window_bounds = array<i64: 128, 64>}, {pipeline_mode = #tpu.pipeline_mode<synchronous>, transform_indices = @transform_8, window_bounds = array<i64: 1, 64>}, {pipeline_mode = #tpu.pipeline_mode<synchronous>, transform_indices = @transform_9, window_bounds = array<i64: 64, 16>}, {pipeline_mode = #tpu.pipeline_mode<synchronous>, transform_indices = @transform_10, window_bounds = array<i64: 1, 16>}, {transform_indices = @transform_11, window_bounds = array<i64: 64, 16>}]} {
    %c64_i32 = arith.constant 64 : i32
    %0 = arith.muli %arg1, %c64_i32 : i32
    %1 = tpu.assume_multiple %0, 64 : i32
    %c0 = arith.constant 0 : index
    %c0_0 = arith.constant 0 : index
    %2 = vector.load %arg4[%c0, %c0_0] : memref<64x1xf32, #tpu.memory_space<vmem>>, vector<64x1xf32>
    %c0_i32 = arith.constant 0 : i32
    %3 = arith.cmpi eq, %arg0, %c0_i32 : i32
    %4 = arith.extui %3 : i1 to i32
    %c0_i32_1 = arith.constant 0 : i32
    %5 = arith.cmpi ne, %4, %c0_i32_1 : i32
    scf.if %5 {
      %c0_4 = arith.constant 0 : index
      %c0_5 = arith.constant 0 : index
      %12 = vector.load %arg2[%c0_4, %c0_5] : memref<64x16xf32, #tpu.memory_space<vmem>>, vector<64x16xf32>
      %13 = arith.truncf %12 : vector<64x16xf32> to vector<64x16xbf16>
      %c0_6 = arith.constant 0 : index
      %c0_7 = arith.constant 0 : index
      %14 = vector.load %arg5[%c0_6, %c0_7] : memref<16x64xbf16, #tpu.memory_space<vmem>>, vector<16x64xbf16>
      %cst = arith.constant dense<0.000000e+00> : vector<64x64xf32>
      %15 = tpu.matmul %13, %14, %cst {dimension_numbers = #tpu.dot_dimension_numbers<[1], [0], [0], [1], [0, 0, 1, 1], [], []>} : vector<64x16xbf16>, vector<16x64xbf16>, vector<64x64xf32> -> vector<64x64xf32>
      %c0_8 = arith.constant 0 : index
      %c0_9 = arith.constant 0 : index
      %16 = vector.load %arg6[%c0_8, %c0_9] : memref<1x64xf32, #tpu.memory_space<vmem>>, vector<1x64xf32>
      %17 = vector.broadcast %16 : vector<1x64xf32> to vector<64x64xf32>
      %18 = arith.addf %15, %17 : vector<64x64xf32>
      %19 = arith.truncf %18 : vector<64x64xf32> to vector<64x64xbf16>
      %c0_10 = arith.constant 0 : index
      %c0_11 = arith.constant 0 : index
      %20 = vector.load %arg7[%c0_10, %c0_11] : memref<64x128xbf16, #tpu.memory_space<vmem>>, vector<64x128xbf16>
      %cst_12 = arith.constant dense<0.000000e+00> : vector<64x128xf32>
      %21 = tpu.matmul %19, %20, %cst_12 {dimension_numbers = #tpu.dot_dimension_numbers<[1], [0], [0], [1], [0, 0, 1, 1], [], []>} : vector<64x64xbf16>, vector<64x128xbf16>, vector<64x128xf32> -> vector<64x128xf32>
      %22 = arith.index_cast %1 : i32 to index
      %c0_13 = arith.constant 0 : index
      %23 = vector.load %arg14[%22, %c0_13] : memref<128x64xf32, #tpu.memory_space<vmem>>, vector<64x64xf32>
      tpu.vector_store %arg14[%22, %c0_13], %18 {strides = array<i32>} : memref<128x64xf32, #tpu.memory_space<vmem>>, vector<64x64xf32>,
      %24 = vector.broadcast %2 : vector<64x1xf32> to vector<64x128xf32>
      %25 = arith.mulf %24, %21 : vector<64x128xf32>
      %26 = arith.truncf %25 : vector<64x128xf32> to vector<64x128xbf16>
      %27 = arith.index_cast %1 : i32 to index
      %c0_14 = arith.constant 0 : index
      %28 = vector.load %arg15[%27, %c0_14] : memref<128x128xbf16, #tpu.memory_space<vmem>>, vector<64x128xbf16>
      tpu.vector_store %arg15[%27, %c0_14], %26 {strides = array<i32>} : memref<128x128xbf16, #tpu.memory_space<vmem>>, vector<64x128xbf16>,
    } else {
    }
    %c1_i32 = arith.constant 1 : i32
    %6 = arith.cmpi eq, %arg0, %c1_i32 : i32
    %7 = arith.extui %6 : i1 to i32
    %c0_i32_2 = arith.constant 0 : i32
    %8 = arith.cmpi ne, %7, %c0_i32_2 : i32
    scf.if %8 {
      %c0_4 = arith.constant 0 : index
      %c0_5 = arith.constant 0 : index
      %12 = vector.load %arg3[%c0_4, %c0_5] : memref<64x128xbf16, #tpu.memory_space<vmem>>, vector<64x128xbf16>
      %c0_6 = arith.constant 0 : index
      %c0_7 = arith.constant 0 : index
      %13 = vector.load %arg15[%c0_6, %c0_7] : memref<128x128xbf16, #tpu.memory_space<vmem>>, vector<128x128xbf16>
      %cst = arith.constant dense<0.000000e+00> : vector<64x128xf32>
      %14 = tpu.matmul %12, %13, %cst {dimension_numbers = #tpu.dot_dimension_numbers<[1], [0], [0], [1], [0, 0, 1, 1], [], []>} : vector<64x128xbf16>, vector<128x128xbf16>, vector<64x128xf32> -> vector<64x128xf32>
      %15 = arith.index_cast %1 : i32 to index
      %c0_8 = arith.constant 0 : index
      %16 = vector.load %arg15[%15, %c0_8] : memref<128x128xbf16, #tpu.memory_space<vmem>>, vector<64x128xbf16>
      %17 = arith.extf %16 : vector<64x128xbf16> to vector<64x128xf32>
      %18 = arith.addf %14, %17 : vector<64x128xf32>
      %19 = vector.broadcast %2 : vector<64x1xf32> to vector<64x128xf32>
      %20 = arith.mulf %19, %18 : vector<64x128xf32>
      %c0_9 = arith.constant 0 : index
      %c0_10 = arith.constant 0 : index
      %21 = vector.load %arg8[%c0_9, %c0_10] : memref<1x128xf32, #tpu.memory_space<vmem>>, vector<1x128xf32>
      %22 = vector.broadcast %21 : vector<1x128xf32> to vector<64x128xf32>
      %23 = arith.addf %20, %22 : vector<64x128xf32>
      %cst_11 = arith.constant 0.000000e+00 : f32
      %24 = vector.broadcast %cst_11 : f32 to vector<64x128xf32>
      %25 = arith.maximumf %23, %24 : vector<64x128xf32>
      %26 = arith.truncf %25 : vector<64x128xf32> to vector<64x128xbf16>
      %c0_12 = arith.constant 0 : index
      %c0_13 = arith.constant 0 : index
      %27 = vector.load %arg9[%c0_12, %c0_13] : memref<128x64xbf16, #tpu.memory_space<vmem>>, vector<128x64xbf16>
      %cst_14 = arith.constant dense<0.000000e+00> : vector<64x64xf32>
      %28 = tpu.matmul %26, %27, %cst_14 {dimension_numbers = #tpu.dot_dimension_numbers<[1], [0], [0], [1], [0, 0, 1, 1], [], []>} : vector<64x128xbf16>, vector<128x64xbf16>, vector<64x64xf32> -> vector<64x64xf32>
      %29 = vector.broadcast %2 : vector<64x1xf32> to vector<64x64xf32>
      %30 = arith.mulf %29, %28 : vector<64x64xf32>
      %31 = arith.truncf %30 : vector<64x64xf32> to vector<64x64xbf16>
      %32 = arith.index_cast %1 : i32 to index
      %c0_15 = arith.constant 0 : index
      %33 = vector.load %arg16[%32, %c0_15] : memref<128x64xbf16, #tpu.memory_space<vmem>>, vector<64x64xbf16>
      tpu.vector_store %arg16[%32, %c0_15], %31 {strides = array<i32>} : memref<128x64xbf16, #tpu.memory_space<vmem>>, vector<64x64xbf16>,
    } else {
    }
    %c2_i32 = arith.constant 2 : i32
    %9 = arith.cmpi eq, %arg0, %c2_i32 : i32
    %10 = arith.extui %9 : i1 to i32
    %c0_i32_3 = arith.constant 0 : i32
    %11 = arith.cmpi ne, %10, %c0_i32_3 : i32
    scf.if %11 {
      %c0_4 = arith.constant 0 : index
      %c0_5 = arith.constant 0 : index
      %12 = vector.load %arg3[%c0_4, %c0_5] : memref<64x128xbf16, #tpu.memory_space<vmem>>, vector<64x128xbf16>
      %c0_6 = arith.constant 0 : index
      %c0_7 = arith.constant 0 : index
      %13 = vector.load %arg16[%c0_6, %c0_7] : memref<128x64xbf16, #tpu.memory_space<vmem>>, vector<128x64xbf16>
      %cst = arith.constant dense<0.000000e+00> : vector<64x64xf32>
      %14 = tpu.matmul %12, %13, %cst {dimension_numbers = #tpu.dot_dimension_numbers<[1], [0], [0], [1], [0, 0, 1, 1], [], []>} : vector<64x128xbf16>, vector<128x64xbf16>, vector<64x64xf32> -> vector<64x64xf32>
      %15 = arith.index_cast %1 : i32 to index
      %c0_8 = arith.constant 0 : index
      %16 = vector.load %arg16[%15, %c0_8] : memref<128x64xbf16, #tpu.memory_space<vmem>>, vector<64x64xbf16>
      %17 = arith.extf %16 : vector<64x64xbf16> to vector<64x64xf32>
      %18 = arith.addf %14, %17 : vector<64x64xf32>
      %19 = vector.broadcast %2 : vector<64x1xf32> to vector<64x64xf32>
      %20 = arith.mulf %19, %18 : vector<64x64xf32>
      %c0_9 = arith.constant 0 : index
      %c0_10 = arith.constant 0 : index
      %21 = vector.load %arg10[%c0_9, %c0_10] : memref<1x64xf32, #tpu.memory_space<vmem>>, vector<1x64xf32>
      %22 = vector.broadcast %21 : vector<1x64xf32> to vector<64x64xf32>
      %23 = arith.addf %20, %22 : vector<64x64xf32>
      %24 = arith.index_cast %1 : i32 to index
      %c0_11 = arith.constant 0 : index
      %25 = vector.load %arg14[%24, %c0_11] : memref<128x64xf32, #tpu.memory_space<vmem>>, vector<64x64xf32>
      %26 = arith.addf %23, %25 : vector<64x64xf32>
      %27 = arith.truncf %26 : vector<64x64xf32> to vector<64x64xbf16>
      %c0_12 = arith.constant 0 : index
      %c0_13 = arith.constant 0 : index
      %28 = vector.load %arg11[%c0_12, %c0_13] : memref<64x16xbf16, #tpu.memory_space<vmem>>, vector<64x16xbf16>
      %cst_14 = arith.constant dense<0.000000e+00> : vector<64x16xf32>
      %29 = tpu.matmul %27, %28, %cst_14 {dimension_numbers = #tpu.dot_dimension_numbers<[1], [0], [0], [1], [0, 0, 1, 1], [], []>} : vector<64x64xbf16>, vector<64x16xbf16>, vector<64x16xf32> -> vector<64x16xf32>
      %c0_15 = arith.constant 0 : index
      %c0_16 = arith.constant 0 : index
      %30 = vector.load %arg12[%c0_15, %c0_16] : memref<1x16xf32, #tpu.memory_space<vmem>>, vector<1x16xf32>
      %31 = vector.broadcast %30 : vector<1x16xf32> to vector<64x16xf32>
      %32 = arith.addf %29, %31 : vector<64x16xf32>
      %c0_17 = arith.constant 0 : index
      %c0_18 = arith.constant 0 : index
      %33 = vector.load %arg13[%c0_17, %c0_18] : memref<64x16xf32, #tpu.memory_space<vmem>>, vector<64x16xf32>
      tpu.vector_store %arg13[%c0_17, %c0_18], %32 {strides = array<i32>} : memref<64x16xf32, #tpu.memory_space<vmem>>, vector<64x16xf32>,
    } else {
    }
    return
  }
  func.func @transform_0(%arg0: i32, %arg1: i32) -> (i32, i32) {
    %c0_i32 = arith.constant 0 : i32
    %0 = arith.cmpi eq, %arg0, %c0_i32 : i32
    %c0_i32_0 = arith.constant 0 : i32
    %1 = arith.select %0, %arg1, %c0_i32_0 : i32
    %c0_i32_1 = arith.constant 0 : i32
    %c0_i32_2 = arith.constant 0 : i32
    return %1, %c0_i32_1 : i32, i32
  }
  func.func @transform_1(%arg0: i32, %arg1: i32) -> (i32, i32) {
    %c0_i32 = arith.constant 0 : i32
    %0 = arith.cmpi eq, %arg0, %c0_i32 : i32
    %c0_i32_0 = arith.constant 0 : i32
    %1 = arith.select %0, %c0_i32_0, %arg1 : i32
    %c0_i32_1 = arith.constant 0 : i32
    %c0_i32_2 = arith.constant 0 : i32
    return %1, %c0_i32_1 : i32, i32
  }
  func.func @transform_2(%arg0: i32, %arg1: i32) -> (i32, i32) {
    %c0_i32 = arith.constant 0 : i32
    %c0_i32_0 = arith.constant 0 : i32
    return %arg1, %c0_i32 : i32, i32
  }
  func.func @transform_3(%arg0: i32, %arg1: i32) -> (i32, i32) {
    %c0_i32 = arith.constant 0 : i32
    %c0_i32_0 = arith.constant 0 : i32
    %c0_i32_1 = arith.constant 0 : i32
    return %c0_i32, %c0_i32_0 : i32, i32
  }
  func.func @transform_4(%arg0: i32, %arg1: i32) -> (i32, i32) {
    %c0_i32 = arith.constant 0 : i32
    %c0_i32_0 = arith.constant 0 : i32
    %c0_i32_1 = arith.constant 0 : i32
    return %c0_i32, %c0_i32_0 : i32, i32
  }
  func.func @transform_5(%arg0: i32, %arg1: i32) -> (i32, i32) {
    %c0_i32 = arith.constant 0 : i32
    %c0_i32_0 = arith.constant 0 : i32
    %c0_i32_1 = arith.constant 0 : i32
    return %c0_i32, %c0_i32_0 : i32, i32
  }
  func.func @transform_6(%arg0: i32, %arg1: i32) -> (i32, i32) {
    %c0_i32 = arith.constant 0 : i32
    %c0_i32_0 = arith.constant 0 : i32
    %c0_i32_1 = arith.constant 0 : i32
    return %c0_i32, %c0_i32_0 : i32, i32
  }
  func.func @transform_7(%arg0: i32, %arg1: i32) -> (i32, i32) {
    %c0_i32 = arith.constant 0 : i32
    %c0_i32_0 = arith.constant 0 : i32
    %c0_i32_1 = arith.constant 0 : i32
    return %c0_i32, %c0_i32_0 : i32, i32
  }
  func.func @transform_8(%arg0: i32, %arg1: i32) -> (i32, i32) {
    %c0_i32 = arith.constant 0 : i32
    %c0_i32_0 = arith.constant 0 : i32
    %c0_i32_1 = arith.constant 0 : i32
    return %c0_i32, %c0_i32_0 : i32, i32
  }
  func.func @transform_9(%arg0: i32, %arg1: i32) -> (i32, i32) {
    %c0_i32 = arith.constant 0 : i32
    %c0_i32_0 = arith.constant 0 : i32
    %c0_i32_1 = arith.constant 0 : i32
    return %c0_i32, %c0_i32_0 : i32, i32
  }
  func.func @transform_10(%arg0: i32, %arg1: i32) -> (i32, i32) {
    %c0_i32 = arith.constant 0 : i32
    %c0_i32_0 = arith.constant 0 : i32
    %c0_i32_1 = arith.constant 0 : i32
    return %c0_i32, %c0_i32_0 : i32, i32
  }
  func.func @transform_11(%arg0: i32, %arg1: i32) -> (i32, i32) {
    %c2_i32 = arith.constant 2 : i32
    %0 = arith.cmpi eq, %arg0, %c2_i32 : i32
    %c0_i32 = arith.constant 0 : i32
    %1 = arith.select %0, %arg1, %c0_i32 : i32
    %c0_i32_0 = arith.constant 0 : i32
    %c0_i32_1 = arith.constant 0 : i32
    return %1, %c0_i32_0 : i32, i32
  }
}

</mosaic_0001>

<bundles_post_ra>
// kernel: graph_net_forward.1
= control target key start
LH: loop header
LB: loop body
LE: loop exit
PB: predicated region body
PF: predicated region fallthrough
CT: control target
= control target key end

     0   :  { %s2468_s0 = inlined_call_operand.vmem [shape: f32[128,16], index: 0, kind: input, shape index: {}]   ;;  %s2469_s1 = inlined_call_operand.vmem [shape: bf16[128,128], index: 1, kind: input, shape index: {}]   ;;  %s2470_s2 = inlined_call_operand.vmem [shape: f32[128,1], index: 2, kind: input, shape index: {}]   ;;  %s2471_s3 = inlined_call_operand.vmem [shape: bf16[16,64], index: 3, kind: input, shape index: {}]   ;;  %s2472_s4 = inlined_call_operand.vmem [shape: f32[1,64], index: 4, kind: input, shape index: {}]   ;;  %s2473_s5 = inlined_call_operand.vmem [shape: bf16[64,128], index: 5, kind: input, shape index: {}]   ;;  %s2474_s6 = inlined_call_operand.vmem [shape: f32[1,128], index: 6, kind: input, shape index: {}]   ;;  %s2475_s7 = inlined_call_operand.vmem [shape: bf16[128,64], index: 7, kind: input, shape index: {}]   ;;  %s2476_s8 = inlined_call_operand.vmem [shape: f32[1,64], index: 8, kind: input, shape index: {}]   ;;  %s2477_s9 = inlined_call_operand.vmem [shape: bf16[64,16], index: 9, kind: input, shape index: {}]   ;;  %s2478_s10 = inlined_call_operand.vmem [shape: f32[1,16], index: 10, kind: input, shape index: {}]   ;;  %s2479_s11 = inlined_call_operand.hbm [shape: f32[128,16], index: 11, kind: output, shape index: {}]  }
   0x1   :  { %2493 = sst [smem:[#allocation18_spill]] %s2479_s11 }
   0x2   :  { %16 = vsyncpa [#allocation6], 0 }
   0x3   :  { %18 = vsyncpa [#allocation6 + $0x1], 0  ;;  %s2103_s17 = smov 0   ;;  %s2105_s18 = smov 0  }
   0x4   :  { %s2107_s19 = smov 0   ;;  %s2109_s20 = smov 0  }
   0x5   :  { %s2111_s21 = smov 0   ;;  %s2113_s22 = smov 0  }
   0x6   :  { %s2115_s23 = smov 0   ;;  %s2117_s24 = smov 0  }
   0x7 LB: > { %2494 = sst [smem:[#allocation8_spill]] %s2007_s17  ;;  %s1588_s25 = sadd.s32 4294967295, %s2035_s24   ;;  %s2035_s24 = sphi %s2117_s24, %s24_s24   ;;  %s2031_s23 = sphi %s2115_s23, %s2518_s23   ;;  %s2027_s22 = sphi %s2113_s22, %s2517_s22   ;;  %s2023_s21 = sphi %s2111_s21, %s2516_s21   ;;  %s2019_s20 = sphi %s2109_s20, %s2515_s20   ;;  %s2015_s19 = sphi %s2107_s19, %s2514_s19   ;;  %s2011_s18 = sphi %s2105_s18, %s2520_s18   ;;  %s2007_s17 = sphi %s2103_s17, %s2519_s17  }
   0x8   : > { %2495 = sst [smem:[#allocation9_spill]] %s2015_s19  ;;  %s33_s26 = sadd.s32 1, %s2027_s22 }
   0x9   : > { %2496 = sst [smem:[#allocation10_spill]] %s2027_s22  ;;  %s36_s27 = sadd.s32 1, %s2031_s23 }
   0xa   : > { %2497 = sst [smem:[#allocation11_spill]] %s2031_s23  ;;  %p34_p0 = scmp.ge.s32.totalorder %s33_s26, 2 }
   0xb   : > { %2498 = sst [smem:[#allocation12_spill]] %s2035_s24  ;;  %p294_p1 = scmp.eq.s32.totalorder %s2031_s23, 2 }
   0xc   : > { %s1589_s28 = sadd.s32 4294967294, %s2035_s24   ;;  %p311_p2 = scmp.ne.s32.totalorder %s2015_s19, %s2011_s18 }
   0xd   : > { %s2522_s26 = smov (%p34_p0, %s33_s26), 0  ;;  %s2524_s27 = smov (!%p34_p0, %s36_s27), %s2031_s23 }
   0xe   : > { %2499 = sst [smem:[#allocation13_spill]] %s2522_s26  ;;  %p38_p3 = scmp.ge.s32.totalorder %s2524_s27, 3 }
   0xf   : > { %s295_s29 = scalar_select %p294_p1, %s2027_s22, 0 }
  0x10   : > { %p312_p4 = scmp.eq.s32.totalorder %s1588_s25, 5  ;;  %p317_p5 = scmp.ne.s32.totalorder %s2011_s18, %s2007_s17 }
  0x11   : > { %p318_p6 = scmp.eq.s32.totalorder %s1589_s28, 5  ;;  %s2526_s27 = smov (%p38_p3, %s2524_s27), 0 }
  0x12   : > { %2500 = sst [smem:[#allocation14_spill]] %s2526_s27  ;;  %p2158_p7 = por %p312_p4, %p311_p2 }
  0x13   : > { %p2162_p8 = por %p318_p6, %p317_p5  ;;  %p296_p9 = scmp.eq.s32.totalorder %s2526_s27, 2 }
  0x14   : > { %s2501_s30 = scalar_select %p2158_p7, 1, 0 }
  0x15   : > { %s2503_s12 = scalar_select %p2162_p8, 1, 0 }
  0x16   : > { %2502 = sst [smem:[#allocation15_spill]] %s2501_s30  ;;  %p1592_p10 = scmp.ge.s32.totalorder %s2035_s24, 1 }
  0x17   : > { %2504 = sst [smem:[#allocation16_spill]] %s2503_s12  ;;  %p395_p11 = scmp.lt.s32.totalorder %s2035_s24, 7 }
  0x18   : > { %s297_s13 = scalar_select %p296_p9, %s2522_s26, 0 }
  0x19   : > { %p396_p12 = pnand %p1592_p10, %p395_p11  ;;  %s301_s15 = sadd.s32 1, %s2015_s19 }
  0x1a   : > { %s298_s14 = ssub.s32 %s295_s29, %s297_s13  ;;  %s2486_s25 = sand.u32 (!%p396_p12), 1, %s2011_s18  }
  0x1b   : > { %p299_p13 = scmp.eq.s32.totalorder %s298_s14, 0  ;;  %399 = sbr.rel (%p396_p12) target bundleno = 1508 (0x5e4), region = 64 }
  0x1c   : > { %p449_p0 = scmp.eq.s32.totalorder (!%p396_p12), %s2023_s21, 0  ;;  %s1593_s28 = sshll.u32 (!%p396_p12), %s2486_s25, 6 }
  0x1d   : > { %s2172_s16 = scalar_select %p299_p13, %s2015_s19, %s301_s15  }
  0x1e   : > { %s1598_s27 = sshll.u32 (!%p396_p12), %s2019_s20, 3  ;;  %s2182_s13 = sshll.u32 (!%p396_p12), %s2019_s20, 6 }
  0x1f   : > { %2505 = sst [smem:[#allocation17_spill]] %s2172_s16  ;;  %p470_p3 = scmp.lt.s32.totalorder (!%p396_p12), %s1598_s27, 15 }
  0x20   : > { %s2213_s17 = scalar_lea.vmem (!%p396_p12), [#allocation5], %s1593_s28  ;;  %p1601_p4 = scmp.ne.s32.totalorder (!%p396_p12), %s2023_s21, 0 }
  0x22   : > { %s450_s26 = scalar_select %p449_p0, %s2019_s20, 0 }
  0x23   : > { %s460_s23 = scalar_select %p449_p0, 0, %s2019_s20 }
  0x24   : > { %s1594_s29 = sshll.u32 %s450_s26, 3  ;;  %s2532_s27 = smov (!%p470_p3, %s1598_s27), 15  ;;  %v1912_v8 = vld [vmem:[%s2471_s3] sm:$0xff] (!%p1601_p4)   ;;  %vm519_vm0 = vcmask (!%p1601_p4), 130048   ;;  %v1914_v19 = vld [vmem:[%s2473_s5 + $0x8] sm:$0xff] (!%p1601_p4)   ;;  %v1915_v23 = vld [vmem:[%s2473_s5 + $0x10] sm:$0xff] (!%p1601_p4)  }
  0x25   : > { %p452_p1 = scmp.lt.s32.totalorder %s1594_s29, 15  ;;  %s1596_s14 = sshll.u32 %s460_s23, 3  ;;  %1712 = vmatprep.subr.bf16.mxu0 (!%p1601_p4), %v1912_v8  ;;  %v1913_v18 = vld [vmem:[%s2473_s5] sm:$0xff] (!%p1601_p4)   ;;  %v1916_v24 = vld [vmem:[%s2473_s5 + $0x18] sm:$0xff] (!%p1601_p4)   ;;  %v2037_v25 = vmov (!%p1601_p4), 0   ;;  %vm633_vm1 = vcmask (!%p1601_p4), 523264  }
  0x26   : > { %p462_p2 = scmp.lt.s32.totalorder %s1596_s14, 15  ;;  %s1599_s26 = sshll.u32 %s2532_s27, 3  ;;  %1713 = vmatpush3.bf16.msra.mxu0 (!%p1601_p4), %v1912_v8  ;;  %1826 = vmatprep.subr.bf16.mxu1 (!%p1601_p4), %v1913_v18  ;;  %v1602_v26 = vld [vmem:[%s2472_s4] ss:$0 sm:$0xff] (!%p1601_p4) }
  0x27   : > { %s2528_s29 = smov (!%p452_p1, %s1594_s29), 15  ;;  %s473_s30 = scalar_lea.vmem %s2470_s2, %s1599_s26  ;;  %1722 = vmatprep.subr.bf16.mxu0 (!%p1601_p4), %v1913_v18  ;;  %1830 = vmatpush3.bf16.msra.mxu1 (!%p1601_p4), %v1913_v18 }
  0x28   : > { %s2530_s14 = smov (!%p462_p2, %s1596_s14), 15  ;;  %s1595_s15 = sshll.u32 %s2528_s29, 3  ;;  %v2197_v0 = vld [vmem:[%s473_s30] sm:$0xff]  ;;  %v2199_v1 = vld [vmem:[%s473_s30 + $0x8] sm:$0xff]  ;;  %v2201_v2 = vld [vmem:[%s473_s30 + $0x10] sm:$0xff]  ;;  %1827 = vmatprep.subr.bf16.mxu1 (!%p1601_p4), %v1914_v19  ;;  %1911 = vset.pattern.permute.xlu1 (!%p1601_p4), %v2037_v25 }
  0x29   : > { %s2187_s19 = scalar_lea.vmem %s2468_s0, %s1595_s15  ;;  %s1597_s12 = sshll.u32 %s2530_s14, 2  ;;  %v2203_v3 = vld [vmem:[%s473_s30 + $0x18] sm:$0xff]  ;;  %v2205_v4 = vld [vmem:[%s473_s30 + $0x20] sm:$0xff]  ;;  %v2207_v5 = vld [vmem:[%s473_s30 + $0x28] sm:$0xff]  ;;  %1910 = vset.pattern.permute.xlu0 (!%p1601_p4), %v2037_v25  ;;  %732 = vperm.xlu1 (!%p1601_p4), %1911, %v2201_v2  }
  0x2a   : > { %s2192_s24 = scalar_lea.vmem %s2469_s1, %s1597_s12  ;;  %v2209_v6 = vld [vmem:[%s473_s30 + $0x30] sm:$0xff]  ;;  %v2211_v7 = vld [vmem:[%s473_s30 + $0x38] sm:$0xff]  ;;  %491 = sbr.rel (%p1601_p4) target bundleno = 495 (0x1ef), region = 68  ;;  %v492_v9 = vld [vmem:[%s2187_s19] sm:$0xff] (!%p1601_p4)  ;;  %722 = vperm.xlu0 (!%p1601_p4), %1910, %v2197_v0  }
  0x2b   : > { %v493_v10 = vld [vmem:[%s2187_s19 + $0x8] sm:$0xff] (!%p1601_p4)  ;;  %v494_v11 = vld [vmem:[%s2187_s19 + $0x10] sm:$0xff] (!%p1601_p4)  ;;  %v495_v13 = vld [vmem:[%s2187_s19 + $0x18] sm:$0xff] (!%p1601_p4)  ;;  %1831 = vmatpush3.bf16.msra.mxu1 (!%p1601_p4), %v1914_v19  ;;  %s711_s26 = scalar_lea.vmem (!%p1601_p4), [#allocation2], %s2182_s13  ;;  %s772_s23 = sshra.s32 (!%p1601_p4), %s2182_s13, 4 }
  0x2c   : > { %v500_v12 = vpack.c.bf16 (!%p1601_p4), %v493_v10, %v492_v9  ;;  %v496_v14 = vld [vmem:[%s2187_s19 + $0x20] sm:$0xff] (!%p1601_p4)  ;;  %v497_v15 = vld [vmem:[%s2187_s19 + $0x28] sm:$0xff] (!%p1601_p4)  ;;  %v501_v16 = vpack.c.bf16 (!%p1601_p4), %v495_v13, %v494_v11  ;;  %v498_v20 = vld [vmem:[%s2187_s19 + $0x30] sm:$0xff] (!%p1601_p4)  ;;  %1828 = vmatprep.subr.bf16.mxu1 (!%p1601_p4), %v1915_v23  ;;  %s1616_s11 = sshll.u32 (!%p1601_p4), %s772_s23, 3 }
  0x2d   : > { %v502_v17 = vpack.c.bf16 (!%p1601_p4), %v497_v15, %v496_v14  ;;  %v499_v21 = vld [vmem:[%s2187_s19 + $0x38] sm:$0xff] (!%p1601_p4)  ;;  %737 = vperm.xlu1 (!%p1601_p4), %1911, %v2203_v3   ;;  %s775_s22 = scalar_lea.vmem (!%p1601_p4), [#allocation3], %s1616_s11 }
  0x2e   : > { %1714 = vmatprep.mubr.msk.bf16.mxu0 (!%p1601_p4), %vm519_vm0, %v500_v12  ;;  %v503_v22 = vpack.c.bf16 (!%p1601_p4), %v499_v21, %v498_v20  ;;  %727 = vperm.xlu0 (!%p1601_p4), %1910, %v2199_v1  }
  0x2f   : > { %1715 = vmatmul.mubr.msk.bf16.vlgmr.msra.gmra.mrb[0].mxu0 (!%p1601_p4), %vm519_vm0, %v501_v16  ;;  %1832 = vmatpush3.bf16.msra.mxu1 (!%p1601_p4), %v1915_v23 }
  0x30   : > { %1718 = vmatprep.mubr.msk.bf16.mxu0 (!%p1601_p4), %vm519_vm0, %v502_v17  ;;  %1723 = vmatpush3.bf16.msra.mxu0 (!%p1601_p4), %v1913_v18 }
  0x31   : > { %1724 = vmatprep.subr.bf16.mxu0 %v1914_v19  ;;  %1829 = vmatprep.subr.bf16.mxu1 %v1916_v24 }
  0x32   : > { %747 = vperm.xlu1 %1911, %v2207_v5   ;;  %742 = vperm.xlu0 %1910, %v2205_v4  }
  0x33   : > { %1833 = vmatpush3.bf16.msra.mxu1 %v1916_v24 }
  0x34   : > { %1725 = vmatpush3.bf16.msra.mxu0 %v1914_v19 }
  0x35   : > { %1726 = vmatprep.subr.bf16.mxu0 %v1915_v23 }
  0x36   : > { %757 = vperm.xlu1 %1911, %v2211_v7   ;;  %752 = vperm.xlu0 %1910, %v2209_v6  }
  0x37   : > { %1719 = vmatmul.mubr.msk.bf16.gmra.mrb[4].mxu0 %vm519_vm0, %v503_v22 }
  0x38   : > { %1727 = vmatpush3.bf16.msra.mxu0 %v1915_v23 }
  0x39   : > { %1728 = vmatprep.subr.bf16.mxu0 %v1916_v24 }
  0x3c   : > { %1729 = vmatpush3.bf16.msra.mxu0 %v1916_v24 }
  0xa8   : > { %v733_v47 = vpop.permute.xlu1 %732 }
  0xa9   : > { %v723_v48 = vpop.permute.xlu0 %722 }
  0xac   : > { %v738_v49 = vpop.permute.xlu1 %737 }
  0xad   : > { %v728_v50 = vpop.permute.xlu0 %727 }
  0xb1   : > { %v748_v54 = vpop.permute.xlu1 %747  ;;  %v743_v58 = vpop.permute.xlu0 %742 }
  0xb5   : > { %v758_v8 = vpop.permute.xlu1 %757  ;;  %v753_v10 = vpop.permute.xlu0 %752 }
 0x102   : > { %v1716_v27 = vpop.f32.mrb[0].mxu0 }
 0x103   : > { %v575_v28 = vadd.f32 %v1716_v27, %v1602_v26  ;;  %v566_v29 = vpop.f32.mrb[1].mxu0 }
 0x104   : > { %v567_v30 = vadd.f32 %v1602_v26, %v566_v29  ;;  %v1717_v31 = vpop.f32.mrb[2].mxu0 }
 0x105   : > { %714 = vst.msk [vmem:[%s711_s26 + $0x10] sm:$0xff] %vm633_vm1, %v575_v28  ;;  %v578_v32 = vadd.f32 %v1717_v31, %v1602_v26  ;;  %v569_v33 = vpop.f32.mrb[3].mxu0 }
 0x106   : > { %712 = vst.msk [vmem:[%s711_s26] sm:$0xff] %vm633_vm1, %v567_v30  ;;  %v570_v34 = vadd.f32 %v1602_v26, %v569_v33 }
 0x107   : > { %v598_v35 = vpack.c.bf16 %v578_v32, %v575_v28  ;;  %715 = vst.msk [vmem:[%s711_s26 + $0x18] sm:$0xff] %vm633_vm1, %v578_v32 }
 0x108   : > { %v597_v36 = vpack.c.bf16 %v570_v34, %v567_v30  ;;  %713 = vst.msk [vmem:[%s711_s26 + $0x8] sm:$0xff] %vm633_vm1, %v570_v34 }
 0x10a   : > { %v1720_v37 = vpop.f32.mrb[4].mxu0  ;;  %1730 = vmatprep.mubr.msk.bf16.mxu0 %vm633_vm1, %v597_v36 }
 0x10b   : > { %v591_v38 = vadd.f32 %v1720_v37, %v1602_v26  ;;  %v582_v39 = vpop.f32.mrb[5].mxu0  ;;  %1731 = vmatmul.mubr.msk.bf16.vlgmr.msra.gmra.mrb[8].mxu0 %vm633_vm1, %v598_v35 }
 0x10c   : > { %v583_v40 = vadd.f32 %v1602_v26, %v582_v39  ;;  %v1721_v41 = vpop.f32.mrb[6].mxu0 }
 0x10d   : > { %718 = vst.msk [vmem:[%s711_s26 + $0x30] sm:$0xff] %vm633_vm1, %v591_v38  ;;  %v594_v42 = vadd.f32 %v1721_v41, %v1602_v26  ;;  %v585_v43 = vpop.f32.mrb[7].mxu0 }
 0x10e   : > { %716 = vst.msk [vmem:[%s711_s26 + $0x20] sm:$0xff] %vm633_vm1, %v583_v40  ;;  %v586_v44 = vadd.f32 %v1602_v26, %v585_v43 }
 0x10f   : > { %v600_v45 = vpack.c.bf16 %v594_v42, %v591_v38  ;;  %719 = vst.msk [vmem:[%s711_s26 + $0x38] sm:$0xff] %vm633_vm1, %v594_v42 }
 0x110   : > { %717 = vst.msk [vmem:[%s711_s26 + $0x28] sm:$0xff] %vm633_vm1, %v586_v44  ;;  %v599_v46 = vpack.c.bf16 %v586_v44, %v583_v40 }
 0x112   : > { %1734 = vmatprep.mubr.msk.bf16.mxu1 %vm633_vm1, %v599_v46 }
 0x113   : > { %1735 = vmatmul.mubr.msk.bf16.vlgmr.msra.gmra.mrb[0].mxu1 %vm633_vm1, %v600_v45 }
 0x1de   : > { %v1732_v51 = vpop.f32.mrb[8].mxu0 }
 0x1df   : > { %v680_v52 = vpop.f32.mrb[9].mxu0  ;;  %v762_v55 = vmul.f32 %v1732_v51, %v733_v47 }
 0x1e0   : > { %v1733_v53 = vpop.f32.mrb[10].mxu0  ;;  %v760_v59 = vmul.f32 %v723_v48, %v680_v52 }
 0x1e1   : > { %v763_v56 = vmul.f32 %v1733_v53, %v738_v49  ;;  %v683_v57 = vpop.f32.mrb[11].mxu0 }
 0x1e2   : > { %v761_v60 = vmul.f32 %v728_v50, %v683_v57 }
 0x1e3   : > { %v769_v61 = vpack.c.bf16 %v763_v56, %v762_v55 }
 0x1e4   : > { %v768_v62 = vpack.c.bf16 %v761_v60, %v760_v59 }
 0x1e5   : > { %777 = vst [vmem:[%s775_s22 + $0x8] sm:$0xff] %v769_v61 }
 0x1e6   : > { %776 = vst [vmem:[%s775_s22] sm:$0xff] %v768_v62  ;;  %v1736_v63 = vpop.f32.mrb[0].mxu1 }
 0x1e7   : > { %v696_v9 = vpop.f32.mrb[1].mxu1  ;;  %v766_v12 = vmul.f32 %v1736_v63, %v753_v10 }
 0x1e8   : > { %v1737_v11 = vpop.f32.mrb[2].mxu1  ;;  %v764_v15 = vmul.f32 %v743_v58, %v696_v9 }
 0x1e9   : > { %v767_v13 = vmul.f32 %v1737_v11, %v758_v8  ;;  %v699_v14 = vpop.f32.mrb[3].mxu1 }
 0x1ea   : > { %v765_v16 = vmul.f32 %v748_v54, %v699_v14 }
 0x1eb   : > { %v771_v17 = vpack.c.bf16 %v767_v13, %v766_v12 }
 0x1ec   : > { %v770_v18 = vpack.c.bf16 %v765_v16, %v764_v15 }
 0x1ed   : > { %779 = vst [vmem:[%s775_s22 + $0x18] sm:$0xff] %v771_v17 }
 0x1ee   : > { %778 = vst [vmem:[%s775_s22 + $0x10] sm:$0xff] %v770_v18 }
 0x1ef PF: > { %p1617_p5 = scmp.ne.s32.totalorder %s2023_s21, 1 }
 0x1f0   : > { %v2038_v21 = vmov (!%p1617_p5), 0   ;;  %v1919_v22 = vld [vmem:[%s2192_s24] sm:$0xff] (!%p1617_p5)   ;;  %v1924_v26 = vld [vmem:[%s2475_s7 + $0x8] sm:$0xff] (!%p1617_p5)   ;;  %v1925_v28 = vld [vmem:[%s2475_s7 + $0x10] sm:$0xff] (!%p1617_p5)   ;;  %s800_s12 = sshra.s32 (!%p1617_p5), %s2182_s13, 4  ;;  %vm1123_vm2 = vcmask (!%p1617_p5), 523264  }
 0x1f1   : > { %783 = sbr.rel (%p1617_p5) target bundleno = 988 (0x3dc), region = 72  ;;  %1917 = vset.pattern.permute.xlu0 (!%p1617_p5), %v2038_v21  ;;  %1918 = vset.pattern.permute.xlu1 (!%p1617_p5), %v2038_v21  ;;  %v1923_v25 = vld [vmem:[%s2475_s7] sm:$0xff] (!%p1617_p5)   ;;  %v1926_v29 = vld [vmem:[%s2475_s7 + $0x18] sm:$0xff] (!%p1617_p5)   ;;  %v1920_v34 = vld [vmem:[%s2192_s24 + $0x8] sm:$0xff] (!%p1617_p5)   ;;  %s2306_s16 = sshll.u32 (!%p1617_p5), %s800_s12, 3 }
 0x1f2   : > { %907 = vperm.xlu0 (!%p1617_p5), %1917, %v2197_v0   ;;  %917 = vperm.xlu1 (!%p1617_p5), %1918, %v2201_v2   ;;  %v1927_v31 = vld [vmem:[%s2475_s7 + $0x20] sm:$0xff] (!%p1617_p5)   ;;  %v1921_v35 = vld [vmem:[%s2192_s24 + $0x10] sm:$0xff] (!%p1617_p5)   ;;  %v1922_v36 = vld [vmem:[%s2192_s24 + $0x18] sm:$0xff] (!%p1617_p5)   ;;  %s803_s25 = scalar_lea.vmem (!%p1617_p5), [#allocation3], %s2306_s16  ;;  %s1122_s19 = scalar_lea.vmem (!%p1617_p5), [#allocation4], %s2306_s16 }
 0x1f3   : > { %1754 = vmatprep.mubr.bf16.mxu0 (!%p1617_p5), %v1919_v22  ;;  %1762 = vmatprep.subr.bf16.mxu1 (!%p1617_p5), %v1923_v25  ;;  %v1928_v37 = vld [vmem:[%s2475_s7 + $0x28] sm:$0xff] (!%p1617_p5)   ;;  %v1929_v38 = vld [vmem:[%s2475_s7 + $0x30] sm:$0xff] (!%p1617_p5)   ;;  %v1930_v39 = vld [vmem:[%s2475_s7 + $0x38] sm:$0xff] (!%p1617_p5)  }
 0x1f4   : > { %1763 = vmatpush3.bf16.msra.mxu1 (!%p1617_p5), %v1923_v25  ;;  %v1623_v53 = vld [vmem:[%s2474_s6] ss:$0 sm:$0xff] (!%p1617_p5) }
 0x1f5   : > { %v792_v19 = vld [vmem:[#allocation3] sm:$0xff] (!%p1617_p5)  ;;  %v793_v20 = vld [vmem:[#allocation3 + $0x8] sm:$0xff] (!%p1617_p5)  ;;  %v794_v23 = vld [vmem:[#allocation3 + $0x10] sm:$0xff] (!%p1617_p5)  ;;  %1764 = vmatprep.subr.bf16.mxu1 (!%p1617_p5), %v1924_v26 }
 0x1f6   : > { %1738 = vmatprep.subr.bf16.mxu0 (!%p1617_p5), %v792_v19  ;;  %v795_v24 = vld [vmem:[#allocation3 + $0x18] sm:$0xff] (!%p1617_p5)  ;;  %912 = vperm.xlu0 (!%p1617_p5), %1917, %v2199_v1   ;;  %v796_v27 = vld [vmem:[#allocation3 + $0x20] sm:$0xff] (!%p1617_p5)  ;;  %v797_v30 = vld [vmem:[#allocation3 + $0x28] sm:$0xff] (!%p1617_p5) }
 0x1f7   : > { %1739 = vmatpush3.bf16.msra.mxu0 (!%p1617_p5), %v792_v19  ;;  %922 = vperm.xlu1 (!%p1617_p5), %1918, %v2203_v3   ;;  %v798_v32 = vld [vmem:[#allocation3 + $0x30] sm:$0xff] (!%p1617_p5)  ;;  %v799_v33 = vld [vmem:[#allocation3 + $0x38] sm:$0xff] (!%p1617_p5)  ;;  %v805_v42 = vld [vmem:[%s803_s25 + $0x8] sm:$0xff] (!%p1617_p5) }
 0x1f8   : > { %1740 = vmatprep.subr.bf16.mxu0 %v793_v20  ;;  %1765 = vmatpush3.bf16.msra.mxu1 %v1924_v26  ;;  %v804_v43 = vld [vmem:[%s803_s25] sm:$0xff]  ;;  %v810_v44 = vunpack.c.l.bf16 %v805_v42  ;;  %v811_v47 = vunpack.c.h.bf16 %v805_v42  ;;  %v807_v56 = vld [vmem:[%s803_s25 + $0x18] sm:$0xff]  ;;  %v806_v60 = vld [vmem:[%s803_s25 + $0x10] sm:$0xff] }
 0x1f9   : > { %1766 = vmatprep.subr.bf16.mxu1 %v1925_v28  ;;  %v808_v46 = vunpack.c.l.bf16 %v804_v43  ;;  %v809_v50 = vunpack.c.h.bf16 %v804_v43  ;;  %v814_v10 = vunpack.c.l.bf16 %v807_v56  ;;  %v812_v13 = vunpack.c.l.bf16 %v806_v60 }
 0x1fa   : > { %927 = vperm.xlu0 %1917, %v2205_v4   ;;  %v815_v16 = vunpack.c.h.bf16 %v807_v56  ;;  %v813_v18 = vunpack.c.h.bf16 %v806_v60 }
 0x1fb   : > { %1741 = vmatpush3.bf16.msra.mxu0 %v793_v20  ;;  %932 = vperm.xlu1 %1918, %v2207_v5  }
 0x1fc   : > { %1742 = vmatprep.subr.bf16.mxu0 %v794_v23  ;;  %1767 = vmatpush3.bf16.msra.mxu1 %v1925_v28 }
 0x1fd   : > { %1768 = vmatprep.subr.bf16.mxu1 %v1926_v29 }
 0x1fe   : > { %937 = vperm.xlu0 %1917, %v2209_v6  }
 0x1ff   : > { %1743 = vmatpush3.bf16.msra.mxu0 %v794_v23  ;;  %942 = vperm.xlu1 %1918, %v2211_v7  }
 0x200   : > { %1744 = vmatprep.subr.bf16.mxu0 %v795_v24  ;;  %1769 = vmatpush3.bf16.msra.mxu1 %v1926_v29 }
 0x201   : > { %1770 = vmatprep.subr.bf16.mxu1 %v1927_v31 }
 0x203   : > { %1745 = vmatpush3.bf16.msra.mxu0 %v795_v24 }
 0x204   : > { %1746 = vmatprep.subr.bf16.mxu0 %v796_v27  ;;  %1771 = vmatpush3.bf16.msra.mxu1 %v1927_v31 }
 0x205   : > { %1772 = vmatprep.subr.bf16.mxu1 %v1928_v37 }
 0x207   : > { %1747 = vmatpush3.bf16.msra.mxu0 %v796_v27 }
 0x208   : > { %1748 = vmatprep.subr.bf16.mxu0 %v797_v30  ;;  %1773 = vmatpush3.bf16.msra.mxu1 %v1928_v37 }
 0x209   : > { %1774 = vmatprep.subr.bf16.mxu1 %v1929_v38 }
 0x20b   : > { %1749 = vmatpush3.bf16.msra.mxu0 %v797_v30 }
 0x20c   : > { %1750 = vmatprep.subr.bf16.mxu0 %v798_v32  ;;  %1775 = vmatpush3.bf16.msra.mxu1 %v1929_v38 }
 0x20d   : > { %1776 = vmatprep.subr.bf16.mxu1 %v1930_v39 }
 0x20f   : > { %1751 = vmatpush3.bf16.msra.mxu0 %v798_v32 }
 0x210   : > { %1752 = vmatprep.subr.bf16.mxu0 %v799_v33  ;;  %1777 = vmatpush3.bf16.msra.mxu1 %v1930_v39 }
 0x213   : > { %1753 = vmatpush3.bf16.msra.mxu0 %v799_v33 }
 0x216   : > { %1755 = vmatmul.mubr.bf16.vlgmr.msra.gmra.mrb[0].mxu0 %v1920_v34 }
 0x217   : > { %1758 = vmatprep.mubr.bf16.mxu0 %v1921_v35 }
 0x21e   : > { %1759 = vmatmul.mubr.bf16.gmra.mrb[4].mxu0 %v1922_v36 }
 0x271   : > { %v2308_v40 = vpop.permute.xlu0 %907  ;;  %v2310_v41 = vpop.permute.xlu1 %917 }
 0x275   : > { %v2313_v45 = vpop.permute.xlu0 %912 }
 0x276   : > { %v2315_v48 = vpop.permute.xlu1 %922 }
 0x279   : > { %v2321_v61 = vpop.permute.xlu0 %927 }
 0x27a   : > { %v2325_v11 = vpop.permute.xlu1 %932 }
 0x27d   : > { %v938_v24 = vpop.permute.xlu0 %937 }
 0x27e   : > { %v943_v33 = vpop.permute.xlu1 %942 }
 0x2e9   : > { %v1756_v49 = vpop.f32.mrb[0].mxu0 }
 0x2ea   : > { %v883_v51 = vadd.f32 %v1756_v49, %v810_v44  ;;  %v874_v52 = vpop.f32.mrb[1].mxu0 }
 0x2eb   : > { %v875_v54 = vadd.f32 %v874_v52, %v808_v46  ;;  %v1757_v55 = vpop.f32.mrb[2].mxu0 }
 0x2ec   : > { %v947_v57 = vmul.f32 %v2310_v41, %v883_v51  ;;  %v886_v58 = vadd.f32 %v1757_v55, %v811_v47  ;;  %v877_v59 = vpop.f32.mrb[3].mxu0 }
 0x2ed   : > { %v945_v62 = vmul.f32 %v2308_v40, %v875_v54  ;;  %v878_v63 = vadd.f32 %v877_v59, %v809_v50 }
 0x2ee   : > { %v962_v8 = vadd.f32 %v1623_v53, %v947_v57  ;;  %v948_v9 = vmul.f32 %v2315_v48, %v886_v58 }
 0x2ef   : > { %v946_v12 = vmul.f32 %v2313_v45, %v878_v63  ;;  %v960_v14 = vadd.f32 %v1623_v53, %v945_v62 }
 0x2f0   : > { %v963_v15 = vadd.f32 %v1623_v53, %v948_v9  ;;  %v970_v20 = vmax.f32 %v962_v8, 0.0 }
 0x2f1   : > { %v1760_v17 = vpop.f32.mrb[4].mxu0  ;;  %v961_v19 = vadd.f32 %v1623_v53, %v946_v12  ;;  %v968_v27 = vmax.f32 %v960_v14, 0.0 }
 0x2f2   : > { %v971_v21 = vmax.f32 %v963_v15, 0.0  ;;  %v899_v22 = vadd.f32 %v1760_v17, %v814_v10  ;;  %v890_v23 = vpop.f32.mrb[5].mxu0 }
 0x2f3   : > { %v891_v25 = vadd.f32 %v890_v23, %v812_v13  ;;  %v1761_v26 = vpop.f32.mrb[6].mxu0  ;;  %v969_v28 = vmax.f32 %v961_v19, 0.0 }
 0x2f4   : > { %v951_v29 = vmul.f32 %v938_v24, %v899_v22  ;;  %v902_v30 = vadd.f32 %v1761_v26, %v815_v16  ;;  %v893_v31 = vpop.f32.mrb[7].mxu0  ;;  %v977_v32 = vpack.c.bf16 %v971_v21, %v970_v20 }
 0x2f5   : > { %v949_v34 = vmul.f32 %v2321_v61, %v891_v25  ;;  %v894_v35 = vadd.f32 %v893_v31, %v813_v18  ;;  %v976_v36 = vpack.c.bf16 %v969_v28, %v968_v27 }
 0x2f6   : > { %v966_v37 = vadd.f32 %v1623_v53, %v951_v29  ;;  %v952_v38 = vmul.f32 %v943_v33, %v902_v30 }
 0x2f7   : > { %v964_v39 = vadd.f32 %v1623_v53, %v949_v34  ;;  %v950_v42 = vmul.f32 %v2325_v11, %v894_v35  ;;  %1778 = vmatprep.mubr.bf16.mxu1 %v976_v36 }
 0x2f8   : > { %v967_v43 = vadd.f32 %v1623_v53, %v952_v38  ;;  %1779 = vmatmul.mubr.bf16.vlgmr.msra.gmra.mrb[0].mxu1 %v977_v32  ;;  %v974_v46 = vmax.f32 %v966_v37, 0.0 }
 0x2f9   : > { %v965_v44 = vadd.f32 %v1623_v53, %v950_v42  ;;  %v972_v49 = vmax.f32 %v964_v39, 0.0 }
 0x2fa   : > { %v975_v47 = vmax.f32 %v967_v43, 0.0 }
 0x2fb   : > { %v973_v50 = vmax.f32 %v965_v44, 0.0 }
 0x2fc   : > { %v979_v51 = vpack.c.bf16 %v975_v47, %v974_v46 }
 0x2fd   : > { %v978_v52 = vpack.c.bf16 %v973_v50, %v972_v49 }
 0x2ff   : > { %1782 = vmatprep.mubr.bf16.mxu1 %v978_v52 }
 0x300   : > { %1783 = vmatmul.mubr.bf16.gmra.mrb[4].mxu1 %v979_v51 }
 0x3cb   : > { %v1780_v54 = vpop.f32.mrb[0].mxu1 }
 0x3cc   : > { %v1078_v55 = vpop.f32.mrb[1].mxu1  ;;  %v1111_v57 = vmul.f32 %v1780_v54, %v2310_v41 }
 0x3cd   : > { %v1781_v56 = vpop.f32.mrb[2].mxu1  ;;  %v1109_v60 = vmul.f32 %v1078_v55, %v2308_v40 }
 0x3ce   : > { %v1112_v58 = vmul.f32 %v1781_v56, %v2315_v48  ;;  %v1081_v59 = vpop.f32.mrb[3].mxu1 }
 0x3cf   : > { %v1110_v53 = vmul.f32 %v1081_v59, %v2313_v45 }
 0x3d0   : > { %v1118_v62 = vpack.c.bf16 %v1112_v58, %v1111_v57 }
 0x3d1   : > { %v1117_v63 = vpack.c.bf16 %v1110_v53, %v1109_v60 }
 0x3d2   : > { %1125 = vst.msk [vmem:[%s1122_s19 + $0x8] sm:$0xff] %vm1123_vm2, %v1118_v62 }
 0x3d3   : > { %1124 = vst.msk [vmem:[%s1122_s19] sm:$0xff] %vm1123_vm2, %v1117_v63  ;;  %v1784_v8 = vpop.f32.mrb[4].mxu1 }
 0x3d4   : > { %v1094_v9 = vpop.f32.mrb[5].mxu1  ;;  %v1115_v12 = vmul.f32 %v1784_v8, %v938_v24 }
 0x3d5   : > { %v1785_v10 = vpop.f32.mrb[6].mxu1  ;;  %v1113_v48 = vmul.f32 %v1094_v9, %v2321_v61 }
 0x3d6   : > { %v1116_v41 = vmul.f32 %v1785_v10, %v943_v33  ;;  %v1097_v13 = vpop.f32.mrb[7].mxu1 }
 0x3d7   : > { %v1114_v40 = vmul.f32 %v1097_v13, %v2325_v11 }
 0x3d8   : > { %v1120_v14 = vpack.c.bf16 %v1116_v41, %v1115_v12 }
 0x3d9   : > { %v1119_v15 = vpack.c.bf16 %v1114_v40, %v1113_v48 }
 0x3da   : > { %1127 = vst.msk [vmem:[%s1122_s19 + $0x18] sm:$0xff] %vm1123_vm2, %v1120_v14 }
 0x3db   : > { %1126 = vst.msk [vmem:[%s1122_s19 + $0x10] sm:$0xff] %vm1123_vm2, %v1119_v15 }
 0x3dc PF: > { %p1633_p6 = scmp.ne.s32.totalorder %s2023_s21, 2 }
 0x3dd   : > { %v2039_v17 = vmov (!%p1633_p6), 0   ;;  %v1933_v61 = vld [vmem:[%s2192_s24] sm:$0xff] (!%p1633_p6)   ;;  %v1936_v20 = vld [vmem:[%s2192_s24 + $0x18] sm:$0xff] (!%p1633_p6)   ;;  %s2371_s29 = scalar_lea.vmem (!%p1633_p6), [#allocation2], %s2182_s13  ;;  %vm1376_vm3 = vcmask (!%p1633_p6), 523264   ;;  %vm1454_vm4 = vcmask (!%p1633_p6), 130048  }
 0x3de   : > { %1131 = sbr.rel (%p1633_p6) target bundleno = 1479 (0x5c7), region = 76  ;;  %1931 = vset.pattern.permute.xlu0 (!%p1633_p6), %v2039_v17  ;;  %1932 = vset.pattern.permute.xlu1 (!%p1633_p6), %v2039_v17  ;;  %v1937_v19 = vld [vmem:[%s2477_s9] sm:$0xff] (!%p1633_p6)   ;;  %v1940_v21 = vld [vmem:[%s2477_s9 + $0x18] sm:$0xff] (!%p1633_p6)   ;;  %v1319_v55 = vld [vmem:[%s2371_s29 + $0x10] sm:$0xff] (!%p1633_p6) }
 0x3df   : > { %1255 = vperm.xlu0 (!%p1633_p6), %1931, %v2197_v0   ;;  %1265 = vperm.xlu1 (!%p1633_p6), %1932, %v2201_v2   ;;  %v1639_v35 = vld [vmem:[%s2476_s8] ss:$0 sm:$0xff] (!%p1633_p6)  ;;  %v1320_v57 = vld [vmem:[%s2371_s29 + $0x18] sm:$0xff] (!%p1633_p6)  ;;  %v1318_v63 = vld [vmem:[%s2371_s29 + $0x8] sm:$0xff] (!%p1633_p6) }
 0x3e0   : > { %1802 = vmatprep.mubr.bf16.mxu0 (!%p1633_p6), %v1933_v61  ;;  %1810 = vmatprep.subr.bf16.mxu1 (!%p1633_p6), %v1937_v19  ;;  %v1317_v62 = vld [vmem:[%s2371_s29] sm:$0xff] (!%p1633_p6) }
 0x3e1   : > { %1811 = vmatpush3.bf16.msra.mxu1 (!%p1633_p6), %v1937_v19 }
 0x3e2   : > { %v1140_v45 = vld [vmem:[#allocation4] sm:$0xff] (!%p1633_p6)  ;;  %v1141_v16 = vld [vmem:[#allocation4 + $0x8] sm:$0xff] (!%p1633_p6)  ;;  %v1142_v11 = vld [vmem:[#allocation4 + $0x10] sm:$0xff] (!%p1633_p6) }
 0x3e3   : > { %1786 = vmatprep.subr.bf16.mxu0 (!%p1633_p6), %v1140_v45  ;;  %v1143_v18 = vld [vmem:[#allocation4 + $0x18] sm:$0xff] (!%p1633_p6)  ;;  %1260 = vperm.xlu0 (!%p1633_p6), %1931, %v2199_v1   ;;  %v1144_v0 = vld [vmem:[#allocation4 + $0x20] sm:$0xff] (!%p1633_p6)  ;;  %v1145_v1 = vld [vmem:[#allocation4 + $0x28] sm:$0xff] (!%p1633_p6) }
 0x3e4   : > { %1787 = vmatpush3.bf16.msra.mxu0 (!%p1633_p6), %v1140_v45  ;;  %1270 = vperm.xlu1 (!%p1633_p6), %1932, %v2203_v3   ;;  %v1146_v2 = vld [vmem:[#allocation4 + $0x30] sm:$0xff] (!%p1633_p6)  ;;  %v1147_v3 = vld [vmem:[#allocation4 + $0x38] sm:$0xff] (!%p1633_p6) }
 0x3e5   : > { %1788 = vmatprep.subr.bf16.mxu0 %v1141_v16 }
 0x3e7   : > { %1275 = vperm.xlu0 %1931, %v2205_v4   ;;  %v1934_v4 = vld [vmem:[%s2192_s24 + $0x8] sm:$0xff]  }
 0x3e8   : > { %1789 = vmatpush3.bf16.msra.mxu0 %v1141_v16  ;;  %1280 = vperm.xlu1 %1932, %v2207_v5   ;;  %v1935_v5 = vld [vmem:[%s2192_s24 + $0x10] sm:$0xff]   ;;  %s1148_s24 = sshra.s32 %s2182_s13, 4 }
 0x3e9   : > { %1790 = vmatprep.subr.bf16.mxu0 %v1142_v11  ;;  %s1634_s12 = sshll.u32 %s1148_s24, 3 }
 0x3ea   : > { %s1151_s16 = scalar_lea.vmem [#allocation4], %s1634_s12 }
 0x3eb   : > { %1285 = vperm.xlu0 %1931, %v2209_v6   ;;  %v1938_v6 = vld [vmem:[%s2477_s9 + $0x8] sm:$0xff]   ;;  %v1152_v25 = vld [vmem:[%s1151_s16] sm:$0xff]  ;;  %v1155_v38 = vld [vmem:[%s1151_s16 + $0x18] sm:$0xff] }
 0x3ec   : > { %1791 = vmatpush3.bf16.msra.mxu0 %v1142_v11  ;;  %1290 = vperm.xlu1 %1932, %v2211_v7   ;;  %v1939_v7 = vld [vmem:[%s2477_s9 + $0x10] sm:$0xff]   ;;  %v1153_v24 = vld [vmem:[%s1151_s16 + $0x8] sm:$0xff]  ;;  %v1156_v28 = vunpack.c.l.bf16 %v1152_v25  ;;  %v1157_v32 = vunpack.c.h.bf16 %v1152_v25  ;;  %v1162_v52 = vunpack.c.l.bf16 %v1155_v38  ;;  %v1163_v53 = vunpack.c.h.bf16 %v1155_v38 }
 0x3ed   : > { %1792 = vmatprep.subr.bf16.mxu0 %v1143_v18  ;;  %1812 = vmatprep.subr.bf16.mxu1 %v1938_v6  ;;  %v1158_v26 = vunpack.c.l.bf16 %v1153_v24  ;;  %v1159_v29 = vunpack.c.h.bf16 %v1153_v24  ;;  %v1154_v44 = vld [vmem:[%s1151_s16 + $0x10] sm:$0xff] }
 0x3ee   : > { %1813 = vmatpush3.bf16.msra.mxu1 %v1938_v6  ;;  %v1160_v59 = vunpack.c.l.bf16 %v1154_v44  ;;  %v1161_v10 = vunpack.c.h.bf16 %v1154_v44  ;;  %v1324_v6 = vld [vmem:[%s2371_s29 + $0x38] sm:$0xff] }
 0x3ef   : > { %1814 = vmatprep.subr.bf16.mxu1 %v1939_v7 }
 0x3f0   : > { %1793 = vmatpush3.bf16.msra.mxu0 %v1143_v18 }
 0x3f1   : > { %1794 = vmatprep.subr.bf16.mxu0 %v1144_v0 }
 0x3f2   : > { %1815 = vmatpush3.bf16.msra.mxu1 %v1939_v7 }
 0x3f3   : > { %1816 = vmatprep.subr.bf16.mxu1 %v1940_v21 }
 0x3f4   : > { %1795 = vmatpush3.bf16.msra.mxu0 %v1144_v0 }
 0x3f5   : > { %1796 = vmatprep.subr.bf16.mxu0 %v1145_v1 }
 0x3f6   : > { %1817 = vmatpush3.bf16.msra.mxu1 %v1940_v21  ;;  %v1321_v21 = vld [vmem:[%s2371_s29 + $0x20] sm:$0xff] }
 0x3f8   : > { %1797 = vmatpush3.bf16.msra.mxu0 %v1145_v1 }
 0x3f9   : > { %1798 = vmatprep.subr.bf16.mxu0 %v1146_v2 }
 0x3fc   : > { %1799 = vmatpush3.bf16.msra.mxu0 %v1146_v2 }
 0x3fd   : > { %1800 = vmatprep.subr.bf16.mxu0 %v1147_v3 }
 0x400   : > { %1801 = vmatpush3.bf16.msra.mxu0 %v1147_v3 }
 0x403   : > { %1803 = vmatmul.mubr.bf16.vlgmr.msra.gmra.mrb[0].mxu0 %v1934_v4 }
 0x404   : > { %1806 = vmatprep.mubr.bf16.mxu0 %v1935_v5  ;;  %v1323_v5 = vld [vmem:[%s2371_s29 + $0x30] sm:$0xff] }
 0x40b   : > { %1807 = vmatmul.mubr.bf16.gmra.mrb[4].mxu0 %v1936_v20 }
 0x45e   : > { %v1256_v22 = vpop.permute.xlu0 %1255  ;;  %v1266_v23 = vpop.permute.xlu1 %1265 }
 0x462   : > { %v1261_v27 = vpop.permute.xlu0 %1260 }
 0x463   : > { %v1271_v30 = vpop.permute.xlu1 %1270 }
 0x466   : > { %v1276_v46 = vpop.permute.xlu0 %1275 }
 0x467   : > { %v1281_v54 = vpop.permute.xlu1 %1280 }
 0x46a   : > { %v1286_v40 = vpop.permute.xlu0 %1285 }
 0x46b   : > { %v1291_v19 = vpop.permute.xlu1 %1290 }
 0x4d6   : > { %v1804_v31 = vpop.f32.mrb[0].mxu0 }
 0x4d7   : > { %v1231_v33 = vadd.f32 %v1804_v31, %v1158_v26  ;;  %v1222_v34 = vpop.f32.mrb[1].mxu0  ;;  %v1640_v31 = vld [vmem:[%s2478_s10] ss:$0 sm:$0xff] }
 0x4d8   : > { %v1223_v36 = vadd.f32 %v1222_v34, %v1156_v28  ;;  %v1805_v37 = vpop.f32.mrb[2].mxu0 }
 0x4d9   : > { %v1295_v39 = vmul.f32 %v1266_v23, %v1231_v33  ;;  %v1234_v42 = vadd.f32 %v1805_v37, %v1159_v29  ;;  %v1225_v43 = vpop.f32.mrb[3].mxu0  ;;  %v1322_v23 = vld [vmem:[%s2371_s29 + $0x28] sm:$0xff] }
 0x4da   : > { %v1293_v47 = vmul.f32 %v1256_v22, %v1223_v36  ;;  %v1226_v49 = vadd.f32 %v1225_v43, %v1157_v32 }
 0x4db   : > { %v1310_v50 = vadd.f32 %v1639_v35, %v1295_v39  ;;  %v1296_v51 = vmul.f32 %v1271_v30, %v1234_v42 }
 0x4dc   : > { %v1308_v56 = vadd.f32 %v1639_v35, %v1293_v47  ;;  %v1294_v58 = vmul.f32 %v1261_v27, %v1226_v49 }
 0x4dd   : > { %v1311_v60 = vadd.f32 %v1639_v35, %v1296_v51  ;;  %v1327_v12 = vadd.f32 %v1319_v55, %v1310_v50 }
 0x4de   : > { %v1309_v8 = vadd.f32 %v1639_v35, %v1294_v58  ;;  %v1808_v9 = vpop.f32.mrb[4].mxu0  ;;  %v1325_v45 = vadd.f32 %v1317_v62, %v1308_v56 }
 0x4df   : > { %v1328_v41 = vadd.f32 %v1320_v57, %v1311_v60  ;;  %v1247_v13 = vadd.f32 %v1808_v9, %v1162_v52  ;;  %v1238_v48 = vpop.f32.mrb[5].mxu0 }
 0x4e0   : > { %v1239_v14 = vadd.f32 %v1238_v48, %v1160_v59  ;;  %v1809_v15 = vpop.f32.mrb[6].mxu0  ;;  %v1326_v16 = vadd.f32 %v1318_v63, %v1309_v8 }
 0x4e1   : > { %v1299_v17 = vmul.f32 %v1286_v40, %v1247_v13  ;;  %v1250_v61 = vadd.f32 %v1809_v15, %v1163_v53  ;;  %v1241_v11 = vpop.f32.mrb[7].mxu0  ;;  %v1334_v18 = vpack.c.bf16 %v1328_v41, %v1327_v12 }
 0x4e2   : > { %v1297_v0 = vmul.f32 %v1276_v46, %v1239_v14  ;;  %v1242_v1 = vadd.f32 %v1241_v11, %v1161_v10  ;;  %v1333_v2 = vpack.c.bf16 %v1326_v16, %v1325_v45 }
 0x4e3   : > { %v1314_v3 = vadd.f32 %v1639_v35, %v1299_v17  ;;  %v1300_v4 = vmul.f32 %v1291_v19, %v1250_v61 }
 0x4e4   : > { %v1312_v20 = vadd.f32 %v1639_v35, %v1297_v0  ;;  %v1298_v7 = vmul.f32 %v1281_v54, %v1242_v1  ;;  %1818 = vmatprep.mubr.msk.bf16.mxu1 %vm1376_vm3, %v1333_v2 }
 0x4e5   : > { %v1315_v22 = vadd.f32 %v1639_v35, %v1300_v4  ;;  %1819 = vmatmul.mubr.msk.bf16.vlgmr.msra.gmra.mrb[0].mxu1 %vm1376_vm3, %v1334_v18  ;;  %v1331_v25 = vadd.f32 %v1323_v5, %v1314_v3 }
 0x4e6   : > { %v1313_v24 = vadd.f32 %v1639_v35, %v1298_v7  ;;  %v1329_v27 = vadd.f32 %v1321_v21, %v1312_v20 }
 0x4e7   : > { %v1332_v26 = vadd.f32 %v1324_v6, %v1315_v22 }
 0x4e8   : > { %v1330_v28 = vadd.f32 %v1322_v23, %v1313_v24 }
 0x4e9   : > { %v1336_v29 = vpack.c.bf16 %v1332_v26, %v1331_v25 }
 0x4ea   : > { %v1335_v30 = vpack.c.bf16 %v1330_v28, %v1329_v27 }
 0x4ec   : > { %1822 = vmatprep.mubr.msk.bf16.mxu1 %vm1376_vm3, %v1335_v30 }
 0x4ed   : > { %1823 = vmatmul.mubr.msk.bf16.gmra.mrb[4].mxu1 %vm1376_vm3, %v1336_v29 }
 0x5b8   : > { %v1820_v32 = vpop.f32.mrb[0].mxu1 }
 0x5b9   : > { %v1432_v33 = vadd.f32 %v1820_v32, %v1640_v31  ;;  %v1423_v34 = vpop.f32.mrb[1].mxu1 }
 0x5ba   : > { %v1424_v35 = vadd.f32 %v1640_v31, %v1423_v34  ;;  %v1821_v36 = vpop.f32.mrb[2].mxu1 }
 0x5bb   : > { %1457 = vst.msk [vmem:[%s2213_s17 + $0x10] sm:$0xff] %vm1454_vm4, %v1432_v33  ;;  %v1435_v37 = vadd.f32 %v1821_v36, %v1640_v31  ;;  %v1426_v38 = vpop.f32.mrb[3].mxu1 }
 0x5bc   : > { %1455 = vst.msk [vmem:[%s2213_s17] sm:$0xff] %vm1454_vm4, %v1424_v35  ;;  %v1427_v39 = vadd.f32 %v1640_v31, %v1426_v38 }
 0x5bd   : > { %1458 = vst.msk [vmem:[%s2213_s17 + $0x18] sm:$0xff] %vm1454_vm4, %v1435_v37 }
 0x5be   : > { %1456 = vst.msk [vmem:[%s2213_s17 + $0x8] sm:$0xff] %vm1454_vm4, %v1427_v39 }
 0x5c0   : > { %v1824_v42 = vpop.f32.mrb[4].mxu1 }
 0x5c1   : > { %v1448_v43 = vadd.f32 %v1824_v42, %v1640_v31  ;;  %v1439_v44 = vpop.f32.mrb[5].mxu1 }
 0x5c2   : > { %v1440_v46 = vadd.f32 %v1640_v31, %v1439_v44  ;;  %v1825_v47 = vpop.f32.mrb[6].mxu1 }
 0x5c3   : > { %1461 = vst.msk [vmem:[%s2213_s17 + $0x30] sm:$0xff] %vm1454_vm4, %v1448_v43  ;;  %v1451_v49 = vadd.f32 %v1825_v47, %v1640_v31  ;;  %v1442_v50 = vpop.f32.mrb[7].mxu1 }
 0x5c4   : > { %1459 = vst.msk [vmem:[%s2213_s17 + $0x20] sm:$0xff] %vm1454_vm4, %v1440_v46  ;;  %v1443_v51 = vadd.f32 %v1640_v31, %v1442_v50 }
 0x5c5   : > { %1462 = vst.msk [vmem:[%s2213_s17 + $0x38] sm:$0xff] %vm1454_vm4, %v1451_v49 }
 0x5c6   : > { %1460 = vst.msk [vmem:[%s2213_s17 + $0x28] sm:$0xff] %vm1454_vm4, %v1443_v51 }
 0x5c7 PF: > { %p1471_p9 = scmp.eq.s32.totalorder %s2023_s21, 2  ;;  %s1479_s15 = sshll.u32 %s2213_s17, 4  ;;  %s2407_s15 = int_to_ptr.vmem [resolvable:$true] %s1479_s15 }
 0x5c8   : > { %s2507_s22 = sld [smem:[#allocation18_spill]]  ;;  %s2509_s24 = sand.u32 1, %s2011_s18  }
 0x5c9   : > { %s2534_s20 = smov (!%p1471_p9, %s2019_s20), 0  ;;  %s2416_s12 = scalar_lea.sflag [#allocation6], %s2509_s24 }
 0x5ca   : > { %s1654_s26 = sshll.u32 %s2534_s20, 10  ;;  %s1941_s16 = scalar_lea.vmem %s2407_s15, 1024 }
 0x5cb   : > { %p1942_p10 = scmp.ne.s32.totalorder %s2407_s15, %s1941_s16  ;;  %s2040_s21 = smov [#allocation5]  }
 0x5cc   : > { %s1945_s17 = sshll.u32 %s2040_s21, 4  ;;  %s1946_s17 = int_to_ptr.vmem [resolvable:$false] %s1945_s17 }
 0x5cd   : > { %p1943_p11 = pnand %p1942_p10, %p2158_p7  ;;  %s1947_s25 = scalar_lea.vmem %s1946_s17, 2048 }
 0x5ce   : > { %s2508_s27 = smov %s2507_s22  ;;  %s2412_s30 = scalar_lea.hbm %s2507_s22, %s1654_s26 }
 0x5cf   : > { %p1944_p12 = pneg %p1943_p11  ;;  %p1948_p13 = scmp.lt.s32.totalorder %s2407_s15, %s1946_s17 }
 0x5d0   : > { %p1949_p0 = scmp.lt.s32.totalorder %s1947_s25, %s1941_s16 }
 0x5d2   : > { %p1950_p1 = por %p1949_p0, %p1948_p13 }
 0x5d4   : > { %p1951_p2 = pnand %p1950_p1, %p1944_p12 }
 0x5d6   : > { %1954 = shalt.err (!%p1951_p2)
}
 0x5d7   : > { %s1955_s20 = scalar_lea.hbm %s2412_s30, 1024  ;;  %s1959_s13 = scalar_lea.hbm %s2508_s27, 2048 }
 0x5d8   : > { %p1956_p3 = scmp.ne.s32.totalorder %s2412_s30, %s1955_s20  ;;  %p1960_p6 = scmp.lt.u32.totalorder %s2412_s30, %s2508_s27 }
 0x5d9   : > { %p1961_p9 = scmp.lt.u32.totalorder %s1959_s13, %s1955_s20  ;;  %p1963_p11 = scmp.lt.u32.totalorder %s1955_s20, %s2412_s30 }
 0x5da   : > { %p1957_p4 = pnand %p1956_p3, %p2158_p7 }
 0x5db   : > { %p1962_p10 = por %p1961_p9, %p1960_p6 }
 0x5dc   : > { %p1958_p5 = pneg %p1957_p4 }
 0x5dd   : > { %p1964_p12 = por %p1963_p11, %p1962_p10 }
 0x5df   : > { %p1965_p13 = pnand %p1964_p12, %p1958_p5 }
 0x5e1   : > { %1968 = shalt.err (!%p1965_p13)
}
 0x5e2   : > { %s2041_s23 = smov 128   ;;  %s2042_s11 = smov 8  }
 0x5e3   : > { %1834 = dma.vmem_to_hbm [thread:$0]  (%p2158_p7), %s2407_s15, 1024, %s2412_s30, %s2416_s12, %s2041_s23, %s2041_s23, %s2042_s11  }
 0x5e4 PF: > { %s2510_s22 = sld [smem:[#allocation12_spill]]  ;;  %s2511_s24 = sld [smem:[#allocation8_spill]] }
 0x5ea   : > { %p1840_p0 = scmp.ge.s32.totalorder %s2510_s22, 2  ;;  %s1494_s21 = sand.u32 1, %s2511_s24  }
 0x5eb   : > { %s1495_s17 = scalar_lea.sflag [#allocation6], %s1494_s21 }
 0x5ec   : > { %p1837_p1 = pnand %p1840_p0, %p2162_p8 }
 0x5ee   : > { %2002 = dma.done.wait (!%p1837_p1), %s1495_s17, 1024  }
 0x5ef   : > { %2004 = vsyncadd (!%p1837_p1), %s1495_s17, 4294966272  ;;  %s24_s24 = sadd.s32 1, %s2510_s22   ;;  %s2513_s25 = sld [smem:[#allocation9_spill]] }
 0x5f0   : > { %p21_p2 = scmp.ge.s32.totalorder %s24_s24, 8   ;;  %s2514_s19 = sld [smem:[#allocation17_spill]] }
 0x5f1   : > { %s2515_s20 = sld [smem:[#allocation10_spill]]  ;;  %s2516_s21 = sld [smem:[#allocation11_spill]] }
 0x5f2   : > { %s2517_s22 = sld [smem:[#allocation13_spill]]  ;;  %s2518_s23 = sld [smem:[#allocation14_spill]] }
 0x5f3   : > { %s2519_s17 = smov %s2011_s18  ;;  %23 = sbr.rel (!%p21_p2) target bundleno = 7 (0x7), region = 123 }
 0x5f5   : > { %s2520_s18 = smov %s2513_s25 }
 0x5fa   :  { %1500 = vsyncpa [#allocation6], 1 }
 0x5fb   :  { %1502 = vsyncpa [#allocation6 + $0x1], 1 }

</bundles_post_ra>
